<compile_context>
chip_gen: v6e
topology: v6e:2x2x1
jax: 0.10.0
libtpu: 0.0.40
codegen_flags: <defaults>
</compile_context>

<pallas_src>
import functools

import jax
import jax.numpy as jnp
from jax import lax
from jax.experimental import pallas as pl
from jax.experimental.pallas import tpu as pltpu


# ----------------------------- helpers ---------------------------------------

def _pick_tile(n, cap):
    """Largest sublane-friendly tile <= cap that divides n (or n itself)."""
    if n <= cap:
        return n
    for t in range(cap, 7, -1):
        if n % t == 0 and t % 8 == 0:
            return t
    # TODO(synk): no multiple-of-8 divisor <= cap; full-extent block fallback.
    return n


def _vmem_limit_bytes(frac=0.7, fallback=64 * 1024 * 1024):
    """Scoped-VMEM budget from the actual chip, with headroom (v7x: 64 MiB/TC,
    v5e/v6e: 128 MiB).  Falls back to a conservative 64 MiB * frac."""
    try:
        cap = pltpu.get_tpu_info().vmem_capacity_bytes
    except Exception:
        cap = fallback
    return int(cap * frac)


# ------------------------- kernel A: QKV projection ---------------------------

def _qkv_proj_kernel(x_ref, w_ref, q_ref, k_ref, v_ref, *, scale):
    # x_ref: (tr, C) rows of x;  w_ref: (C, 3C) = Wqkv^T;  outputs: (tr, C) each.
    C = x_ref.shape[1]
    qkv = jnp.dot(x_ref[...], w_ref[...],
                  preferred_element_type=jnp.float32)          # (tr, 3C) f32 acc
    # Fold the softmax scale into Q once, here (never rescale score tensors).
    q_ref[...] = (qkv[:, 0 * C:1 * C] * scale).astype(q_ref.dtype)
    k_ref[...] = qkv[:, 1 * C:2 * C].astype(k_ref.dtype)
    v_ref[...] = qkv[:, 2 * C:3 * C].astype(v_ref.dtype)


# --------------- kernel B: flash attention + output projection ----------------

def _flash_attn_proj_kernel(q_ref, k_ref, v_ref, wproj_ref, bproj_ref, o_ref,
                            m_sc, l_sc, acc_sc, *, num_heads):
    # q_ref: (1, tq, C) pre-scaled Q rows (resident across the kv axis)
    # k_ref / v_ref: (1, tk, C) K/V rows for this kv step (already projected)
    # wproj_ref: (C, C) = Wproj^T ;  bproj_ref: (1, C) f32
    # scratch: m_sc/l_sc (tq, H) f32, acc_sc (tq, C) f32 (merged-head, lane-dense)
    _, tq, C = q_ref.shape
    hd = C // num_heads
    cdtype = q_ref.dtype
    ki = pl.program_id(2)

    @pl.when(ki == 0)
    def _init():
        m_sc[...] = jnp.full(m_sc.shape, -jnp.inf, dtype=jnp.float32)
        l_sc[...] = jnp.zeros(l_sc.shape, dtype=jnp.float32)
        acc_sc[...] = jnp.zeros(acc_sc.shape, dtype=jnp.float32)

    q = q_ref[0]            # (tq, C)
    k = k_ref[0]            # (tk, C)
    v = v_ref[0]            # (tk, C)

    # Contract last dims of both operands (no .T -> no per-step XLU transpose).
    dn = (((1,), (1,)), ((), ()))
    for h in range(num_heads):                     # static unroll, H is small
        sl = slice(h * hd, (h + 1) * hd)           # static lane slice = head h
        s = lax.dot_general(q[:, sl], k[:, sl], dn,
                            preferred_element_type=jnp.float32)    # (tq, tk) f32
        m_prev = m_sc[:, h:h + 1]                                   # (tq, 1)
        m_new = jnp.maximum(m_prev, jnp.max(s, axis=-1, keepdims=True))
        alpha = jnp.exp(m_prev - m_new)
        p = jnp.exp(s - m_new)                                      # f32 softmax math
        l_sc[:, h:h + 1] = alpha * l_sc[:, h:h + 1] + jnp.sum(p, axis=-1,
                                                              keepdims=True)
        acc_sc[:, sl] = alpha * acc_sc[:, sl] + jnp.dot(
            p.astype(cdtype), v[:, sl], preferred_element_type=jnp.float32)
        m_sc[:, h:h + 1] = m_new

    @pl.when(ki == pl.num_programs(2) - 1)
    def _finalize():
        # Deferred normalization, per head, via the EUP reciprocal.
        for h in range(num_heads):
            inv_l = pl.reciprocal(l_sc[:, h:h + 1], approx=True)    # (tq, 1)
            acc_sc[:, h * hd:(h + 1) * hd] = acc_sc[:, h * hd:(h + 1) * hd] * inv_l
        ctx = acc_sc[...].astype(cdtype)                            # (tq, C) lane-dense
        y = jnp.dot(ctx, wproj_ref[...],
                    preferred_element_type=jnp.float32) + bproj_ref[...]
        o_ref[0] = y.astype(o_ref.dtype)


# ------------------------------ wrappers --------------------------------------

def prepare_attention_params(wqkv, wproj, bproj, dtype=jnp.bfloat16):
    """One-time parameter prep (transpose + cast; keep out of the hot path).

    wqkv: (3C, C)  wproj: (C, C)  bproj: (C,)  (PyTorch nn.Linear layouts).
    dtype: matmul operand dtype (default bf16 for MXU peak); None keeps input dtype.
    """
    C = wproj.shape[0]
    if dtype is None:
        dtype = wqkv.dtype
    wqkv_t = jnp.transpose(wqkv).astype(dtype)          # (C, 3C)
    wproj_t = jnp.transpose(wproj).astype(dtype)        # (C, C)
    bproj2 = bproj.reshape(1, C).astype(jnp.float32)    # bias added in f32
    return wqkv_t, wproj_t, bproj2


def attention_forward(x, params, *, num_heads, qk_scale=None,
                      q_tile=256, kv_tile=256, row_tile=512):
    """x: (B, N, C); params from prepare_attention_params."""
    wqkv_t, wproj_t, bproj2 = params
    B, N, C = x.shape
    hd = C // num_heads
    scale = float(qk_scale) if qk_scale is not None else float(hd) ** (-0.5)
    cdtype = wqkv_t.dtype                 # matmul operand dtype (bf16 or f32)
    out_dtype = x.dtype
    vmem_limit = _vmem_limit_bytes()

    xc = x.astype(cdtype)

    # ---- kernel A: fused QKV projection (each GEMM exactly once) -----------
    R = B * N
    tr = _pick_tile(R, row_tile)
    x2d = xc.reshape(R, C)
    q2, k2, v2 = pl.pallas_call(
        functools.partial(_qkv_proj_kernel, scale=scale),
        out_shape=(jax.ShapeDtypeStruct((R, C), cdtype),
                   jax.ShapeDtypeStruct((R, C), cdtype),
                   jax.ShapeDtypeStruct((R, C), cdtype)),
        grid_spec=pltpu.PrefetchScalarGridSpec(
            num_scalar_prefetch=0,
            grid=(R // tr,),
            in_specs=[
                pl.BlockSpec((tr, C), lambda r: (r, 0)),          # x rows
                pl.BlockSpec((C, 3 * C), lambda r: (0, 0)),       # Wqkv^T
            ],
            out_specs=(pl.BlockSpec((tr, C), lambda r: (r, 0)),   # Q (pre-scaled)
                       pl.BlockSpec((tr, C), lambda r: (r, 0)),   # K
                       pl.BlockSpec((tr, C), lambda r: (r, 0))),  # V
        ),
        compiler_params=pltpu.CompilerParams(
            dimension_semantics=("parallel",),
            vmem_limit_bytes=vmem_limit),
    )(x2d, wqkv_t)
    q3 = q2.reshape(B, N, C)
    k3 = k2.reshape(B, N, C)
    v3 = v2.reshape(B, N, C)

    # ---- kernel B: flash attention + output projection ---------------------
    tq = _pick_tile(N, q_tile)
    tk = _pick_tile(N, kv_tile)
    out = pl.pallas_call(
        functools.partial(_flash_attn_proj_kernel, num_heads=num_heads),
        out_shape=jax.ShapeDtypeStruct((B, N, C), out_dtype),
        grid_spec=pltpu.PrefetchScalarGridSpec(
            num_scalar_prefetch=0,
            grid=(B, N // tq, N // tk),
            in_specs=[
                pl.BlockSpec((1, tq, C), lambda b, qi, ki: (b, qi, 0)),  # Q tile
                pl.BlockSpec((1, tk, C), lambda b, qi, ki: (b, ki, 0)),  # K tile
                pl.BlockSpec((1, tk, C), lambda b, qi, ki: (b, ki, 0)),  # V tile
                # TODO(synk): constant-index weight/bias blocks are still
                # double-buffered; pipeline_mode=pl.Buffered(1) would reclaim
                # one (C, C) buffer on VMEM-tight v7x configs.
                pl.BlockSpec((C, C), lambda b, qi, ki: (0, 0)),          # Wproj^T
                pl.BlockSpec((1, C), lambda b, qi, ki: (0, 0)),          # proj bias
            ],
            out_specs=pl.BlockSpec((1, tq, C), lambda b, qi, ki: (b, qi, 0)),
            scratch_shapes=[
                pltpu.VMEM((tq, num_heads), jnp.float32),  # running max (no lane pad)
                pltpu.VMEM((tq, num_heads), jnp.float32),  # running denom
                pltpu.VMEM((tq, C), jnp.float32),          # merged-head accumulator
            ],
        ),
        compiler_params=pltpu.CompilerParams(
            dimension_semantics=("parallel", "parallel", "arbitrary"),
            vmem_limit_bytes=vmem_limit),
    )(q3, k3, v3, wproj_t, bproj2)
    return out


def attention_reference(x, wqkv, wproj, bproj, *, num_heads, qk_scale=None):
    """Pure-JAX reference mirroring the PyTorch forward exactly."""
    B, N, C = x.shape
    hd = C // num_heads
    scale = qk_scale if qk_scale is not None else hd ** (-0.5)
    qkv = jnp.einsum('bnc,oc->bno', x, wqkv)                      # (B, N, 3C)
    qkv = qkv.reshape(B, N, 3, num_heads, hd).transpose(2, 0, 3, 1, 4)
    q, k, v = qkv[0], qkv[1], qkv[2]                              # (B, H, N, hd)
    attn = jnp.einsum('bhqd,bhkd->bhqk', q, k) * scale
    attn = jax.nn.softmax(attn, axis=-1)
    out = jnp.einsum('bhqk,bhkd->bhqd', attn, v)
    out = out.transpose(0, 2, 1, 3).reshape(B, N, C)
    return jnp.einsum('bnc,oc->bno', out, wproj) + bproj


if __name__ == "__main__":
    # Small shapes consistent with the module: dim=32, num_heads=8, seq=16, batch=2.
    B, N, C = 2, 16, 32
    num_heads = 8

    key = jax.random.PRNGKey(0)
    kx, kqkv, kp, kb = jax.random.split(key, 4)

    x = jax.random.normal(kx, (B, N, C), dtype=jnp.float32)
    # nn.Linear layouts: weight (out, in), bias (out,).  qkv_bias=False.
    wqkv = jax.random.normal(kqkv, (3 * C, C), dtype=jnp.float32) * 0.05
    wproj = jax.random.normal(kp, (C, C), dtype=jnp.float32) * 0.05
    bproj = jax.random.normal(kb, (C,), dtype=jnp.float32) * 0.05

    ref = attention_reference(x, wqkv, wproj, bproj, num_heads=num_heads)

    # --- f32 operands: exercises multiple q tiles / kv steps (online softmax)
    params_f32 = prepare_attention_params(wqkv, wproj, bproj, dtype=jnp.float32)
    out_tiled = attention_forward(x, params_f32, num_heads=num_heads,
                                  q_tile=8, kv_tile=8)
    out_tiled = jax.block_until_ready(out_tiled)
    assert out_tiled.shape == (B, N, C)
    assert jnp.allclose(out_tiled, ref, atol=5e-3, rtol=5e-3), "tiled f32 mismatch"

    # --- f32 operands, default tiles (whole sequence per step at toy shape)
    out_f32 = attention_forward(x, params_f32, num_heads=num_heads)
    out_f32 = jax.block_until_ready(out_f32)
    assert jnp.allclose(out_f32, ref, atol=5e-3, rtol=5e-3), "f32 mismatch"

    # --- bf16 matmul operands (production default), f32 accumulation/softmax
    params_bf16 = prepare_attention_params(wqkv, wproj, bproj)   # dtype=bf16 default
    out_bf16 = attention_forward(x, params_bf16, num_heads=num_heads)
    out_bf16 = jax.block_until_ready(out_bf16)
    assert jnp.allclose(out_bf16, ref, atol=3e-2, rtol=3e-2), "bf16 mismatch"

    print("KERNEL_OK")
</pallas_src>

<mosaic_0001>
module attributes {stable_mosaic.version = 11 : i64} {
  func.func @_qkv_proj_kernel(%arg0: i32, %arg1: memref<32x32xf32, #tpu.memory_space<vmem>>, %arg2: memref<32x96xf32, #tpu.memory_space<vmem>>, %arg3: memref<32x32xf32, #tpu.memory_space<vmem>>, %arg4: memref<32x32xf32, #tpu.memory_space<vmem>>, %arg5: memref<32x32xf32, #tpu.memory_space<vmem>>) attributes {dimension_semantics = [#tpu.dimension_semantics<parallel>], iteration_bounds = array<i64: 1>, scalar_prefetch = 0 : i64, scratch_operands = 0 : i64, tpu.core_type = #tpu.core_type<tc>, window_params = [{transform_indices = @transform_0, window_bounds = array<i64: 32, 32>}, {pipeline_mode = #tpu.pipeline_mode<synchronous>, transform_indices = @transform_1, window_bounds = array<i64: 32, 96>}, {transform_indices = @transform_2, window_bounds = array<i64: 32, 32>}, {transform_indices = @transform_3, window_bounds = array<i64: 32, 32>}, {transform_indices = @transform_4, window_bounds = array<i64: 32, 32>}]} {
    %c0 = arith.constant 0 : index
    %c0_0 = arith.constant 0 : index
    %0 = vector.load %arg1[%c0, %c0_0] : memref<32x32xf32, #tpu.memory_space<vmem>>, vector<32x32xf32>
    %c0_1 = arith.constant 0 : index
    %c0_2 = arith.constant 0 : index
    %1 = vector.load %arg2[%c0_1, %c0_2] : memref<32x96xf32, #tpu.memory_space<vmem>>, vector<32x96xf32>
    %cst = arith.constant dense<0.000000e+00> : vector<32x96xf32>
    %2 = tpu.matmul %0, %1, %cst {dimension_numbers = #tpu.dot_dimension_numbers<[1], [0], [0], [1], [0, 0, 1, 1], [], []>} : vector<32x32xf32>, vector<32x96xf32>, vector<32x96xf32> -> vector<32x96xf32>
    %3 = vector.extract_strided_slice %2 {offsets = [0, 0], sizes = [32, 32], strides = [1, 1]} : vector<32x96xf32> to vector<32x32xf32>
    %cst_3 = arith.constant 5.000000e-01 : f32
    %4 = vector.broadcast %cst_3 : f32 to vector<32x32xf32>
    %5 = arith.mulf %3, %4 : vector<32x32xf32>
    %c0_4 = arith.constant 0 : index
    %c0_5 = arith.constant 0 : index
    %6 = vector.load %arg3[%c0_4, %c0_5] : memref<32x32xf32, #tpu.memory_space<vmem>>, vector<32x32xf32>
    tpu.vector_store %arg3[%c0_4, %c0_5], %5 {strides = array<i32>} : memref<32x32xf32, #tpu.memory_space<vmem>>, vector<32x32xf32>,
    %7 = vector.extract_strided_slice %2 {offsets = [0, 32], sizes = [32, 32], strides = [1, 1]} : vector<32x96xf32> to vector<32x32xf32>
    %c0_6 = arith.constant 0 : index
    %c0_7 = arith.constant 0 : index
    %8 = vector.load %arg4[%c0_6, %c0_7] : memref<32x32xf32, #tpu.memory_space<vmem>>, vector<32x32xf32>
    tpu.vector_store %arg4[%c0_6, %c0_7], %7 {strides = array<i32>} : memref<32x32xf32, #tpu.memory_space<vmem>>, vector<32x32xf32>,
    %9 = vector.extract_strided_slice %2 {offsets = [0, 64], sizes = [32, 32], strides = [1, 1]} : vector<32x96xf32> to vector<32x32xf32>
    %c0_8 = arith.constant 0 : index
    %c0_9 = arith.constant 0 : index
    %10 = vector.load %arg5[%c0_8, %c0_9] : memref<32x32xf32, #tpu.memory_space<vmem>>, vector<32x32xf32>
    tpu.vector_store %arg5[%c0_8, %c0_9], %9 {strides = array<i32>} : memref<32x32xf32, #tpu.memory_space<vmem>>, vector<32x32xf32>,
    return
  }
  func.func @transform_0(%arg0: i32) -> (i32, i32) {
    %c0_i32 = arith.constant 0 : i32
    %c0_i32_0 = arith.constant 0 : i32
    return %arg0, %c0_i32 : i32, i32
  }
  func.func @transform_1(%arg0: i32) -> (i32, i32) {
    %c0_i32 = arith.constant 0 : i32
    %c0_i32_0 = arith.constant 0 : i32
    %c0_i32_1 = arith.constant 0 : i32
    return %c0_i32, %c0_i32_0 : i32, i32
  }
  func.func @transform_2(%arg0: i32) -> (i32, i32) {
    %c0_i32 = arith.constant 0 : i32
    %c0_i32_0 = arith.constant 0 : i32
    return %arg0, %c0_i32 : i32, i32
  }
  func.func @transform_3(%arg0: i32) -> (i32, i32) {
    %c0_i32 = arith.constant 0 : i32
    %c0_i32_0 = arith.constant 0 : i32
    return %arg0, %c0_i32 : i32, i32
  }
  func.func @transform_4(%arg0: i32) -> (i32, i32) {
    %c0_i32 = arith.constant 0 : i32
    %c0_i32_0 = arith.constant 0 : i32
    return %arg0, %c0_i32 : i32, i32
  }
}

</mosaic_0001>

<bundles_post_ra>
// kernel: tpu_custom_call.1
= control target key start
LH: loop header
LB: loop body
LE: loop exit
PB: predicated region body
PF: predicated region fallthrough
CT: control target
= control target key end

     0   :  { %10 = vsyncpa [#allocation3], 0  ;;  %s474_s0 = inlined_call_operand.hbm [shape: f32[32,32], index: 0, kind: input, shape index: {}]   ;;  %s475_s1 = inlined_call_operand.hbm [shape: f32[32,96], index: 1, kind: input, shape index: {}]   ;;  %s476_s2 = inlined_call_operand.hbm [shape: f32[32,32], index: 2, kind: output, shape index: {0}]   ;;  %s477_s3 = inlined_call_operand.hbm [shape: f32[32,32], index: 3, kind: output, shape index: {1}]   ;;  %s478_s4 = inlined_call_operand.hbm [shape: f32[32,32], index: 4, kind: output, shape index: {2}]  }
   0x1   :  { %11 = vsyncpa [#allocation6], 0 }
   0x2   :  { %12 = vsyncpa [#allocation4], 0 }
   0x3   :  { %13 = vsyncpa [#allocation9], 0  ;;  %s394_s15 = smov [#allocation2]  }
   0x4   :  { %s19_s16 = sshll.u32 %s394_s15, 4  ;;  %s20_s16 = int_to_ptr.vmem [resolvable:$true] %s19_s16 }
   0x5   :  { %s294_s17 = scalar_lea.vmem %s20_s16, 512  ;;  %p299_p1 = scmp.lt.s32.totalorder %s20_s16, %s20_s16 }
   0x6   :  { %p295_p0 = scmp.ne.s32.totalorder %s20_s16, %s294_s17  ;;  %p300_p2 = scmp.lt.s32.totalorder %s294_s17, %s294_s17 }
   0x8   :  { %p301_p3 = por %p300_p2, %p299_p1 }
   0xa   :  { %p302_p4 = pnand %p301_p3, %p295_p0 }
   0xc   :  { %305 = shalt.err (!%p302_p4)
}
   0xd   :  { %s395_s18 = smov 128   ;;  %s396_s19 = smov 8  }
   0xe   :  { %25 = dma.hbm_to_vmem [thread:$0]  %s474_s0, 512, %s20_s16, [#allocation3], %s395_s18, %s395_s18, %s396_s19  }
   0xf   :  { %s397_s22 = smov [#allocation5]  }
  0x10   :  { %s31_s23 = sshll.u32 %s397_s22, 4  ;;  %s32_s23 = int_to_ptr.vmem [resolvable:$true] %s31_s23 }
  0x11   :  { %s314_s24 = scalar_lea.vmem %s32_s23, 512  ;;  %p319_p6 = scmp.lt.s32.totalorder %s32_s23, %s32_s23 }
  0x12   :  { %p315_p5 = scmp.ne.s32.totalorder %s32_s23, %s314_s24  ;;  %p320_p7 = scmp.lt.s32.totalorder %s314_s24, %s314_s24 }
  0x14   :  { %p321_p8 = por %p320_p7, %p319_p6 }
  0x16   :  { %p322_p9 = pnand %p321_p8, %p315_p5 }
  0x18   :  { %325 = shalt.err (!%p322_p9)
}
  0x19   :  { %37 = dma.hbm_to_vmem [thread:$0]  %s475_s1, 512, %s32_s23, [#allocation6], %s395_s18, %s395_s18, %s396_s19  }
  0x1a   :  { %386 = dma.done.wait [#allocation3], 512  }
  0x1b   :  { %387 = vsyncadd [#allocation3], 4294966784 }
  0x1c   :  { %388 = dma.done.wait [#allocation6], 512  }
  0x1d   :  { %389 = vsyncadd [#allocation6], 4294966784  ;;  %v51_v0 = vld [vmem:[#allocation5 + $0x18] sm:$0xff]  ;;  %v50_v1 = vld [vmem:[#allocation5 + $0x10] sm:$0xff]  ;;  %vm52_vm0 = vcmask 261120   ;;  %s398_s0 = smov [#allocation7]  }
  0x1e   :  { %255 = vmatprep.subr.mxu0 %v51_v0  ;;  %269 = vmatprep.subr.mxu1 %v51_v0  ;;  %v49_v2 = vld [vmem:[#allocation5 + $0x8] sm:$0xff]  ;;  %v48_v3 = vld [vmem:[#allocation5] sm:$0xff]  ;;  %v46_v5 = vld [vmem:[#allocation2 + $0x10] sm:$0xff]  ;;  %s199_s1 = sshll.u32 %s398_s0, 4  ;;  %s399_s27 = smov 96   ;;  %s200_s1 = int_to_ptr.vmem [resolvable:$true] %s199_s1 }
  0x1f   :  { %256 = vmatpush3.msra.mxu0 %v51_v0  ;;  %273 = vmatpush3.msra.mxu1 %v51_v0  ;;  %v44_v4 = vld [vmem:[#allocation2] sm:$0xff]  ;;  %v45_v6 = vld [vmem:[#allocation2 + $0x8] sm:$0xff]  ;;  %v47_v7 = vld [vmem:[#allocation2 + $0x18] sm:$0xff]  ;;  %s400_s28 = smov 64   ;;  %s326_s29 = scalar_lea.vmem %s200_s1, 512 }
  0x20   :  { %257 = vmatprep.subr.mxu0 %v50_v1  ;;  %270 = vmatprep.subr.mxu1 %v50_v1  ;;  %p327_p10 = scmp.ne.s32.totalorder %s200_s1, %s326_s29  ;;  %p331_p11 = scmp.lt.s32.totalorder %s200_s1, %s200_s1 }
  0x21   :  { %258 = vmatpush3.msra.mxu0 %v50_v1  ;;  %274 = vmatpush3.msra.mxu1 %v50_v1  ;;  %p332_p12 = scmp.lt.s32.totalorder %s326_s29, %s326_s29 }
  0x22   :  { %259 = vmatprep.subr.mxu0 %v49_v2  ;;  %271 = vmatprep.subr.mxu1 %v49_v2 }
  0x23   :  { %260 = vmatpush3.msra.mxu0 %v49_v2  ;;  %275 = vmatpush3.msra.mxu1 %v49_v2  ;;  %p333_p13 = por %p332_p12, %p331_p11 }
  0x24   :  { %261 = vmatprep.subr.mxu0 %v48_v3  ;;  %272 = vmatprep.subr.mxu1 %v48_v3 }
  0x25   :  { %262 = vmatpush3.msra.mxu0 %v48_v3  ;;  %276 = vmatpush3.msra.mxu1 %v48_v3  ;;  %p334_p0 = pnand %p333_p13, %p327_p10 }
  0x26   :  { %263 = vmatprep.mubr.msk.f32.mxu0 %vm52_vm0, %v44_v4  ;;  %266 = vmatprep.mubr.msk.f32.mxu1 %vm52_vm0, %v46_v5 }
  0x27   :  { %264 = vmatmul.mubr.msk.f32.vlgmr.msra.gmra.mxu0 %vm52_vm0, %v45_v6  ;;  %267 = vmatmul.mubr.msk.f32.vlgmr.msra.gmra.mxu1 %vm52_vm0, %v47_v7 }
  0xe7   :  { %v265_v8 = vpop.f32.mrf.mxu0  ;;  %v268_v9 = vpop.f32.mrf.mxu1 }
  0xe8   :  { %v151_v10 = vmul.f32 0.5, %v265_v8  ;;  %v153_v11 = vmul.f32 0.5, %v268_v9  ;;  %168 = vrot.lane.b32.xlu1 %v268_v9, %s399_s27  ;;  %164 = vrot.lane.b32.xlu0 %v265_v8, %s399_s27 }
  0xe9   :  { %v131_v12 = vpop.f32.mrf.mxu0  ;;  %v141_v13 = vpop.f32.mrf.mxu1 }
  0xea   :  { %155 = vst.msk [vmem:[#allocation7 + $0x8] sm:$0xff] %vm52_vm0, %v151_v10  ;;  %157 = vst.msk [vmem:[#allocation7 + $0x18] sm:$0xff] %vm52_vm0, %v153_v11  ;;  %v150_v14 = vmul.f32 0.5, %v131_v12  ;;  %v152_v15 = vmul.f32 0.5, %v141_v13 }
  0xec   :  { %154 = vst.msk [vmem:[#allocation7] sm:$0xff] %vm52_vm0, %v150_v14  ;;  %156 = vst.msk [vmem:[#allocation7 + $0x10] sm:$0xff] %vm52_vm0, %v152_v15  ;;  %180 = vrot.lane.b32.xlu1 %v265_v8, %s400_s28  ;;  %162 = vrot.lane.b32.xlu0 %v131_v12, %s399_s27 }
  0xed   :  { %337 = shalt.err (!%p334_p0)
}
  0xee   :  { %205 = dma.vmem_to_hbm [thread:$0]  %s200_s1, 512, %s476_s2, [#allocation4], %s395_s18, %s395_s18, %s396_s19  }
  0xef   :  { %s401_s6 = smov [#allocation8]   ;;  %s402_s2 = smov [#allocation10]  }
  0xf0   :  { %166 = vrot.lane.b32.xlu1 %v141_v13, %s399_s27  ;;  %178 = vrot.lane.b32.xlu0 %v131_v12, %s400_s28  ;;  %s211_s7 = sshll.u32 %s401_s6, 4  ;;  %s223_s8 = sshll.u32 %s402_s2, 4  ;;  %s212_s7 = int_to_ptr.vmem [resolvable:$true] %s211_s7  ;;  %s224_s8 = int_to_ptr.vmem [resolvable:$true] %s223_s8 }
  0xf1   :  { %s346_s9 = scalar_lea.vmem %s212_s7, 512  ;;  %p351_p2 = scmp.lt.s32.totalorder %s212_s7, %s212_s7 }
  0xf2   :  { %p347_p1 = scmp.ne.s32.totalorder %s212_s7, %s346_s9  ;;  %p352_p3 = scmp.lt.s32.totalorder %s346_s9, %s346_s9 }
  0xf4   :  { %184 = vrot.lane.b32.xlu1 %v268_v9, %s400_s28  ;;  %182 = vrot.lane.b32.xlu0 %v141_v13, %s400_s28  ;;  %p353_p4 = por %p352_p3, %p351_p2 }
  0xf6   :  { %p354_p5 = pnand %p353_p4, %p347_p1 }
 0x15a   :  { %v169_v16 = vpop.permute.xlu1 %168  ;;  %v165_v17 = vpop.permute.xlu0 %164 }
 0x15b   :  { %177 = vst.msk [vmem:[#allocation8 + $0x18] sm:$0xff] %vm52_vm0, %v169_v16  ;;  %175 = vst.msk [vmem:[#allocation8 + $0x8] sm:$0xff] %vm52_vm0, %v165_v17 }
 0x15e   :  { %v181_v18 = vpop.permute.xlu1 %180  ;;  %v163_v19 = vpop.permute.xlu0 %162 }
 0x15f   :  { %191 = vst.msk [vmem:[#allocation10 + $0x8] sm:$0xff] %vm52_vm0, %v181_v18  ;;  %174 = vst.msk [vmem:[#allocation8] sm:$0xff] %vm52_vm0, %v163_v19 }
 0x162   :  { %v167_v20 = vpop.permute.xlu1 %166  ;;  %v179_v21 = vpop.permute.xlu0 %178 }
 0x163   :  { %176 = vst.msk [vmem:[#allocation8 + $0x10] sm:$0xff] %vm52_vm0, %v167_v20  ;;  %190 = vst.msk [vmem:[#allocation10] sm:$0xff] %vm52_vm0, %v179_v21 }
 0x164   :  { %357 = shalt.err (!%p354_p5)
}
 0x165   :  { %217 = dma.vmem_to_hbm [thread:$0]  %s212_s7, 512, %s477_s3, [#allocation9], %s395_s18, %s395_s18, %s396_s19  }
 0x166   :  { %v185_v22 = vpop.permute.xlu1 %184  ;;  %v183_v23 = vpop.permute.xlu0 %182  ;;  %s366_s12 = scalar_lea.vmem %s224_s8, 512  ;;  %p371_p7 = scmp.lt.s32.totalorder %s224_s8, %s224_s8 }
 0x167   :  { %193 = vst.msk [vmem:[#allocation10 + $0x18] sm:$0xff] %vm52_vm0, %v185_v22  ;;  %192 = vst.msk [vmem:[#allocation10 + $0x10] sm:$0xff] %vm52_vm0, %v183_v23  ;;  %p367_p6 = scmp.ne.s32.totalorder %s224_s8, %s366_s12  ;;  %p372_p8 = scmp.lt.s32.totalorder %s366_s12, %s366_s12 }
 0x169   :  { %p373_p9 = por %p372_p8, %p371_p7 }
 0x16b   :  { %p374_p10 = pnand %p373_p9, %p367_p6 }
 0x16d   :  { %377 = shalt.err (!%p374_p10)
}
 0x16e   :  { %229 = dma.vmem_to_hbm [thread:$0]  %s224_s8, 512, %s478_s4, [#allocation9], %s395_s18, %s395_s18, %s396_s19  }
 0x16f   :  { %390 = dma.done.wait [#allocation4], 512  }
 0x170   :  { %391 = vsyncadd [#allocation4], 4294966784 }
 0x171   :  { %392 = dma.done.wait [#allocation9], 1024  }
 0x172   :  { %393 = vsyncadd [#allocation9], 4294966272 }
 0x173   :  { %239 = vsyncpa [#allocation3], 1 }
 0x174   :  { %240 = vsyncpa [#allocation6], 1 }
 0x175   :  { %241 = vsyncpa [#allocation4], 1 }
 0x176   :  { %242 = vsyncpa [#allocation9], 1 }

</bundles_post_ra>
